<compile_context>
chip_gen: v5e
topology: v5e:2x2
jax: 0.10.0
libtpu: 0.0.40
codegen_flags: <defaults>
</compile_context>

<pallas_src>
import functools
import math

import jax
import jax.numpy as jnp
from jax.experimental import pallas as pl
from jax.experimental.pallas import tpu as pltpu


_VMEM_LIMIT = 64 * 1024 * 1024   # raise scoped VMEM limit (<= physical on v5e/v6e/v7x)


def _round_up(x, m):
    return (x + m - 1) // m * m


# ----------------------------------------------------------------------------
# In-kernel helpers
# ----------------------------------------------------------------------------
def _layer_norm(x, gamma, beta, eps):
    """LayerNorm over the last dim; x f32 (N, D), gamma/beta f32 (1, D)."""
    mu = jnp.mean(x, axis=-1, keepdims=True)
    var = jnp.mean(jnp.square(x - mu), axis=-1, keepdims=True)
    return (x - mu) * jax.lax.rsqrt(var + eps) * gamma + beta


def _mha_core(q, k, v, bias, num_heads, scale):
    """Multi-head attention for one batch element.

    q: (Sq, D), k/v: (Sk, D) bf16; bias: f32 (1|Sq, Sk) or None.
    Heads are a leading einsum batch axis (no per-head lane slicing/concat);
    the 1/sqrt(dh) scale is folded into q once.  Returns (Sq, D) f32.
    """
    sq, d = q.shape
    sk = k.shape[0]
    dh = d // num_heads
    q = (q * scale).astype(q.dtype)
    qh = q.reshape(sq, num_heads, dh)
    kh = k.reshape(sk, num_heads, dh)
    vh = v.reshape(sk, num_heads, dh)
    # Scores: batched over heads, contraction over dh (no explicit .T emitted).
    s = jnp.einsum('qhd,khd->hqk', qh, kh, preferred_element_type=jnp.float32)
    if bias is not None:
        s = s + bias[None]                       # broadcast over heads
    m = jnp.max(s, axis=-1, keepdims=True)
    p = jnp.exp(s - m)
    denom = jnp.sum(p, axis=-1, keepdims=True)
    p = (p * pl.reciprocal(denom, approx=True)).astype(v.dtype)
    o = jnp.einsum('hqk,khd->qhd', p, vh, preferred_element_type=jnp.float32)
    return o.reshape(sq, d)                      # lane-dense (Sq, D) slab


# ----------------------------------------------------------------------------
# Fused self-attention block: LN(x + MHA(x @ Wqkv) @ Wo)
# ----------------------------------------------------------------------------
def _self_attn_block_kernel(*refs, num_heads, scale, causal, has_mask, eps):
    if has_mask:
        (x_ref, m_ref, wqkv_ref, bqkv_ref, wo_ref, bo_ref,
         g_ref, b_ref, o_ref) = refs
        bias = m_ref[0]                          # (1|S, S) f32
    else:
        (x_ref, wqkv_ref, bqkv_ref, wo_ref, bo_ref,
         g_ref, b_ref, o_ref) = refs
        bias = None
    x = x_ref[0]                                 # (S, D) bf16
    s, d = x.shape
    if causal:
        # Generate the causal bias in-kernel — no (B,S,S) HBM mask traffic.
        row = jax.lax.broadcasted_iota(jnp.int32, (s, s), 0)
        col = jax.lax.broadcasted_iota(jnp.int32, (s, s), 1)
        cb = jnp.where(col <= row, 0.0, -1e9).astype(jnp.float32)
        bias = cb if bias is None else bias + cb

    # Fused QKV projection (Wqkv stays VMEM-resident across the batch grid).
    qkv = jnp.dot(x, wqkv_ref[...], preferred_element_type=jnp.float32)
    qkv = (qkv + bqkv_ref[...]).astype(x.dtype)  # (S, 3D)
    q, k, v = qkv[:, :d], qkv[:, d:2 * d], qkv[:, 2 * d:]

    attn = _mha_core(q, k, v, bias, num_heads, scale).astype(x.dtype)

    # Output projection + residual + LayerNorm, all in VMEM.
    proj = jnp.dot(attn, wo_ref[...], preferred_element_type=jnp.float32) + bo_ref[...]
    h = x.astype(jnp.float32) + proj
    o_ref[0] = _layer_norm(h, g_ref[...], b_ref[...], eps).astype(o_ref.dtype)


def self_attention_block(x, attn_p, ln_p, mask, num_heads, causal=False, eps=1e-5):
    """x: (B, S, D) bf16; mask: (B, 1|S, S) additive f32 bias or None."""
    b, s, d = x.shape
    assert d % num_heads == 0, "model dim must be divisible by num_heads"
    scale = 1.0 / math.sqrt(d // num_heads)
    has_mask = mask is not None
    kernel = functools.partial(_self_attn_block_kernel, num_heads=num_heads,
                               scale=scale, causal=causal, has_mask=has_mask,
                               eps=eps)
    const = lambda i: (0, 0)
    in_specs = [pl.BlockSpec((1, s, d), lambda i: (i, 0, 0))]
    operands = [x]
    if has_mask:
        mq, mk = mask.shape[1], mask.shape[2]
        in_specs.append(pl.BlockSpec((1, mq, mk), lambda i: (i, 0, 0)))
        operands.append(mask.astype(jnp.float32))
    # TODO(synk): for long sequences / large D (esp. v7x 64 MiB VMEM) add
    # flash-style KV tiling with online softmax + a (B, Sq-tiles) grid, mark
    # the constant-index weight specs pl.Buffered(1) and K-tile the weights
    # with an f32 accumulator.
    in_specs += [
        pl.BlockSpec((d, 3 * d), const),   # Wqkv resident
        pl.BlockSpec((1, 3 * d), const),
        pl.BlockSpec((d, d), const),       # Wo resident
        pl.BlockSpec((1, d), const),
        pl.BlockSpec((1, d), const),       # LN gamma
        pl.BlockSpec((1, d), const),       # LN beta
    ]
    operands += [attn_p["wqkv"]["w"], attn_p["wqkv"]["b"].reshape(1, 3 * d),
                 attn_p["wo"]["w"], attn_p["wo"]["b"].reshape(1, d),
                 ln_p["g"].reshape(1, d), ln_p["b"].reshape(1, d)]
    return pl.pallas_call(
        kernel,
        out_shape=jax.ShapeDtypeStruct((b, s, d), x.dtype),
        grid=(b,),
        in_specs=in_specs,
        out_specs=pl.BlockSpec((1, s, d), lambda i: (i, 0, 0)),
        compiler_params=pltpu.CompilerParams(
            dimension_semantics=("parallel",),
            vmem_limit_bytes=_VMEM_LIMIT),
    )(*operands)


# ----------------------------------------------------------------------------
# Fused cross-attention block: LN(y + MHA(y@Wq, enc@Wkv) @ Wo)
# ----------------------------------------------------------------------------
def _cross_attn_block_kernel(*refs, num_heads, scale, has_mask, eps):
    if has_mask:
        (y_ref, e_ref, m_ref, wq_ref, bq_ref, wkv_ref, bkv_ref,
         wo_ref, bo_ref, g_ref, b_ref, o_ref) = refs
        bias = m_ref[0]                          # (1|Sq, Sk) f32
    else:
        (y_ref, e_ref, wq_ref, bq_ref, wkv_ref, bkv_ref,
         wo_ref, bo_ref, g_ref, b_ref, o_ref) = refs
        bias = None
    y = y_ref[0]                                 # (Sq, D) bf16
    e = e_ref[0]                                 # (Sk, D) bf16
    d = y.shape[-1]

    q = (jnp.dot(y, wq_ref[...], preferred_element_type=jnp.float32)
         + bq_ref[...]).astype(y.dtype)
    kv = (jnp.dot(e, wkv_ref[...], preferred_element_type=jnp.float32)
          + bkv_ref[...]).astype(e.dtype)        # fused KV projection
    k, v = kv[:, :d], kv[:, d:]

    attn = _mha_core(q, k, v, bias, num_heads, scale).astype(y.dtype)
    proj = jnp.dot(attn, wo_ref[...], preferred_element_type=jnp.float32) + bo_ref[...]
    h = y.astype(jnp.float32) + proj
    o_ref[0] = _layer_norm(h, g_ref[...], b_ref[...], eps).astype(o_ref.dtype)


def cross_attention_block(y, enc_out, attn_p, ln_p, mask, num_heads, eps=1e-5):
    """y: (B, Sq, D), enc_out: (B, Sk, D), mask: (B, 1|Sq, Sk) or None."""
    b, sq, d = y.shape
    sk = enc_out.shape[1]
    assert d % num_heads == 0, "model dim must be divisible by num_heads"
    scale = 1.0 / math.sqrt(d // num_heads)
    has_mask = mask is not None
    kernel = functools.partial(_cross_attn_block_kernel, num_heads=num_heads,
                               scale=scale, has_mask=has_mask, eps=eps)
    const = lambda i: (0, 0)
    in_specs = [pl.BlockSpec((1, sq, d), lambda i: (i, 0, 0)),
                pl.BlockSpec((1, sk, d), lambda i: (i, 0, 0))]
    operands = [y, enc_out]
    if has_mask:
        mq, mk = mask.shape[1], mask.shape[2]
        in_specs.append(pl.BlockSpec((1, mq, mk), lambda i: (i, 0, 0)))
        operands.append(mask.astype(jnp.float32))
    in_specs += [
        pl.BlockSpec((d, d), const), pl.BlockSpec((1, d), const),          # Wq
        pl.BlockSpec((d, 2 * d), const), pl.BlockSpec((1, 2 * d), const),  # Wkv
        pl.BlockSpec((d, d), const), pl.BlockSpec((1, d), const),          # Wo
        pl.BlockSpec((1, d), const), pl.BlockSpec((1, d), const),          # LN
    ]
    operands += [attn_p["wq"]["w"], attn_p["wq"]["b"].reshape(1, d),
                 attn_p["wkv"]["w"], attn_p["wkv"]["b"].reshape(1, 2 * d),
                 attn_p["wo"]["w"], attn_p["wo"]["b"].reshape(1, d),
                 ln_p["g"].reshape(1, d), ln_p["b"].reshape(1, d)]
    return pl.pallas_call(
        kernel,
        out_shape=jax.ShapeDtypeStruct((b, sq, d), y.dtype),
        grid=(b,),
        in_specs=in_specs,
        out_specs=pl.BlockSpec((1, sq, d), lambda i: (i, 0, 0)),
        compiler_params=pltpu.CompilerParams(
            dimension_semantics=("parallel",),
            vmem_limit_bytes=_VMEM_LIMIT),
    )(*operands)


# ----------------------------------------------------------------------------
# Fused FFN block: LN(x + relu(x@W1+b1)@W2+b2), row-tiled
# ----------------------------------------------------------------------------
def _ffn_ln_kernel(x_ref, w1_ref, b1_ref, w2_ref, b2_ref, g_ref, b_ref, o_ref,
                   *, eps):
    x = x_ref[...]                               # (tile_n, D) bf16
    h = jnp.dot(x, w1_ref[...], preferred_element_type=jnp.float32) + b1_ref[...]
    h = jnp.maximum(h, 0.0).astype(x.dtype)      # back to bf16 for 2nd MXU pass
    y = jnp.dot(h, w2_ref[...], preferred_element_type=jnp.float32) + b2_ref[...]
    z = x.astype(jnp.float32) + y                # fused residual
    o_ref[...] = _layer_norm(z, g_ref[...], b_ref[...], eps).astype(o_ref.dtype)


def ffn_ln_block(x, p1, p2, ln_p, eps=1e-5, max_rows=256):
    """x: (N, D) -> LayerNorm(x + FFN(x)).  Weights VMEM-resident."""
    n, d = x.shape
    ff = p1["w"].shape[1]
    # TODO(synk): use 128-row tiles on v5e (4x128^2 MXU) and K-tile /
    # pl.Buffered(1) the resident weights for very large D/FF on v7x.
    tile_n = min(max_rows, _round_up(n, 8))
    n_pad = _round_up(n, tile_n)
    xp = jnp.pad(x, ((0, n_pad - n), (0, 0))) if n_pad != n else x
    const = lambda i: (0, 0)
    out = pl.pallas_call(
        functools.partial(_ffn_ln_kernel, eps=eps),
        out_shape=jax.ShapeDtypeStruct((n_pad, d), x.dtype),
        grid=(n_pad // tile_n,),
        in_specs=[
            pl.BlockSpec((tile_n, d), lambda i: (i, 0)),
            pl.BlockSpec((d, ff), const), pl.BlockSpec((1, ff), const),
            pl.BlockSpec((ff, d), const), pl.BlockSpec((1, d), const),
            pl.BlockSpec((1, d), const), pl.BlockSpec((1, d), const),
        ],
        out_specs=pl.BlockSpec((tile_n, d), lambda i: (i, 0)),
        compiler_params=pltpu.CompilerParams(
            dimension_semantics=("parallel",),
            vmem_limit_bytes=_VMEM_LIMIT),
    )(xp, p1["w"], p1["b"].reshape(1, ff), p2["w"], p2["b"].reshape(1, d),
      ln_p["g"].reshape(1, d), ln_p["b"].reshape(1, d))
    return out[:n] if n_pad != n else out


# ----------------------------------------------------------------------------
# Transformer glue (plain JAX: reshapes, parameter bookkeeping)
# ----------------------------------------------------------------------------
def encoder_layer(p, x, mask, num_heads):
    b, s, d = x.shape
    x = self_attention_block(x, p["attn"], p["ln1"], mask, num_heads, causal=False)
    x2 = ffn_ln_block(x.reshape(b * s, d), p["ff1"], p["ff2"], p["ln2"])
    return x2.reshape(b, s, d)


def decoder_layer(p, y, enc_out, dec_mask, enc_mask, num_heads, causal=True):
    b, s, d = y.shape
    y = self_attention_block(y, p["self_attn"], p["ln1"], dec_mask, num_heads,
                             causal=causal)
    y = cross_attention_block(y, enc_out, p["cross_attn"], p["ln2"], enc_mask,
                              num_heads)
    y2 = ffn_ln_block(y.reshape(b * s, d), p["ff1"], p["ff2"], p["ln3"])
    return y2.reshape(b, s, d)


def transformer_forward(params, enc_in, dec_in=None, enc_mask=None, dec_mask=None,
                        *, num_heads, dec_causal=True, return_enc_output=False):
    """Mirrors Transformer.forward semantics."""
    # TODO(synk): dropout inside the reference nn layers is omitted (inference).
    x = enc_in.astype(jnp.bfloat16)
    for lp in params["encoder"]:
        x = encoder_layer(lp, x, enc_mask, num_heads)
    enc_out = x
    if params["decoder"] is not None:
        y = dec_in.astype(jnp.bfloat16)
        for lp in params["decoder"]:
            y = decoder_layer(lp, y, enc_out, dec_mask, enc_mask, num_heads,
                              causal=dec_causal)
        if return_enc_output:
            return enc_out.astype(jnp.float32), y.astype(jnp.float32)
        return y.astype(jnp.float32)
    return enc_out.astype(jnp.float32)


# ----------------------------------------------------------------------------
# Deterministic parameter initialization (weights bf16, biases/LN params f32)
# ----------------------------------------------------------------------------
def _init_linear(key, din, dout):
    w = (jax.random.normal(key, (din, dout), jnp.float32) * 0.02).astype(jnp.bfloat16)
    b = jnp.zeros((dout,), jnp.float32)
    return {"w": w, "b": b}


def _init_self_mha(key, d):
    k1, k2 = jax.random.split(key, 2)
    return {"wqkv": _init_linear(k1, d, 3 * d), "wo": _init_linear(k2, d, d)}


def _init_cross_mha(key, d):
    k1, k2, k3 = jax.random.split(key, 3)
    return {"wq": _init_linear(k1, d, d), "wkv": _init_linear(k2, d, 2 * d),
            "wo": _init_linear(k3, d, d)}


def _init_ln(d):
    return {"g": jnp.ones((d,), jnp.float32), "b": jnp.zeros((d,), jnp.float32)}


def _init_encoder_layer(key, d, ff):
    k1, k2, k3 = jax.random.split(key, 3)
    return {"attn": _init_self_mha(k1, d), "ln1": _init_ln(d),
            "ff1": _init_linear(k2, d, ff), "ff2": _init_linear(k3, ff, d),
            "ln2": _init_ln(d)}


def _init_decoder_layer(key, d, ff):
    k1, k2, k3, k4 = jax.random.split(key, 4)
    return {"self_attn": _init_self_mha(k1, d), "ln1": _init_ln(d),
            "cross_attn": _init_cross_mha(k2, d), "ln2": _init_ln(d),
            "ff1": _init_linear(k3, d, ff), "ff2": _init_linear(k4, ff, d),
            "ln3": _init_ln(d)}


def init_transformer_params(key, d, ff, n_enc_layers, n_dec_layers):
    keys = jax.random.split(key, n_enc_layers + n_dec_layers)
    enc = [_init_encoder_layer(keys[i], d, ff) for i in range(n_enc_layers)]
    dec = ([_init_decoder_layer(keys[n_enc_layers + i], d, ff) for i in range(n_dec_layers)]
           if n_dec_layers > 0 else None)
    return {"encoder": enc, "decoder": dec}


# ----------------------------------------------------------------------------
if __name__ == "__main__":
    B, S_ENC, S_DEC, D, H, FF = 2, 8, 8, 64, 4, 128

    key = jax.random.PRNGKey(0)
    k_enc, k_dec, k_par = jax.random.split(key, 3)
    enc_in = jax.random.normal(k_enc, (B, S_ENC, D), jnp.float32)
    dec_in = jax.random.normal(k_dec, (B, S_DEC, D), jnp.float32)

    # Encoder key-padding mask: additive bias (B, 1, S_enc); mask last key of batch 1.
    enc_mask = jnp.zeros((B, 1, S_ENC), jnp.float32)
    enc_mask = enc_mask.at[1, 0, S_ENC - 1].set(-1e9)
    # Decoder causal mask is generated in-kernel (dec_causal=True) — no (B,S,S)
    # additive bias is materialized or DMA'd.

    params = init_transformer_params(k_par, D, FF, n_enc_layers=2, n_dec_layers=2)

    enc_out, dec_out = transformer_forward(
        params, enc_in, dec_in, enc_mask, dec_mask=None,
        num_heads=H, dec_causal=True, return_enc_output=True)
    jax.block_until_ready((enc_out, dec_out))

    assert enc_out.shape == (B, S_ENC, D) and dec_out.shape == (B, S_DEC, D)
    assert bool(jnp.all(jnp.isfinite(enc_out))) and bool(jnp.all(jnp.isfinite(dec_out)))
    print("KERNEL_OK")
</pallas_src>

<mosaic_0001>
module attributes {stable_mosaic.version = 11 : i64} {
  func.func @_self_attn_block_kernel(%arg0: i32, %arg1: memref<1x8x64xbf16, #tpu.memory_space<vmem>>, %arg2: memref<1x1x8xf32, #tpu.memory_space<vmem>>, %arg3: memref<64x192xbf16, #tpu.memory_space<vmem>>, %arg4: memref<1x192xf32, #tpu.memory_space<vmem>>, %arg5: memref<64x64xbf16, #tpu.memory_space<vmem>>, %arg6: memref<1x64xf32, #tpu.memory_space<vmem>>, %arg7: memref<1x64xf32, #tpu.memory_space<vmem>>, %arg8: memref<1x64xf32, #tpu.memory_space<vmem>>, %arg9: memref<1x8x64xbf16, #tpu.memory_space<vmem>>) attributes {dimension_semantics = [#tpu.dimension_semantics<parallel>], iteration_bounds = array<i64: 2>, scalar_prefetch = 0 : i64, scratch_operands = 0 : i64, tpu.core_type = #tpu.core_type<tc>, window_params = [{transform_indices = @transform_0, window_bounds = array<i64: 1, 8, 64>}, {transform_indices = @transform_1, window_bounds = array<i64: 1, 1, 8>}, {pipeline_mode = #tpu.pipeline_mode<synchronous>, transform_indices = @transform_2, window_bounds = array<i64: 64, 192>}, {pipeline_mode = #tpu.pipeline_mode<synchronous>, transform_indices = @transform_3, window_bounds = array<i64: 1, 192>}, {pipeline_mode = #tpu.pipeline_mode<synchronous>, transform_indices = @transform_4, window_bounds = array<i64: 64, 64>}, {pipeline_mode = #tpu.pipeline_mode<synchronous>, transform_indices = @transform_5, window_bounds = array<i64: 1, 64>}, {pipeline_mode = #tpu.pipeline_mode<synchronous>, transform_indices = @transform_6, window_bounds = array<i64: 1, 64>}, {pipeline_mode = #tpu.pipeline_mode<synchronous>, transform_indices = @transform_7, window_bounds = array<i64: 1, 64>}, {transform_indices = @transform_8, window_bounds = array<i64: 1, 8, 64>}]} {
    %c0 = arith.constant 0 : index
    %c0_0 = arith.constant 0 : index
    %c0_1 = arith.constant 0 : index
    %0 = vector.load %arg2[%c0, %c0_0, %c0_1] : memref<1x1x8xf32, #tpu.memory_space<vmem>>, vector<1x1x8xf32>
    %1 = vector.shape_cast %0 : vector<1x1x8xf32> to vector<1x8xf32>
    %c0_2 = arith.constant 0 : index
    %c0_3 = arith.constant 0 : index
    %c0_4 = arith.constant 0 : index
    %2 = vector.load %arg1[%c0_2, %c0_3, %c0_4] : memref<1x8x64xbf16, #tpu.memory_space<vmem>>, vector<1x8x64xbf16>
    %3 = vector.shape_cast %2 : vector<1x8x64xbf16> to vector<8x64xbf16>
    %c0_5 = arith.constant 0 : index
    %c0_6 = arith.constant 0 : index
    %4 = vector.load %arg3[%c0_5, %c0_6] : memref<64x192xbf16, #tpu.memory_space<vmem>>, vector<64x192xbf16>
    %cst = arith.constant dense<0.000000e+00> : vector<8x192xf32>
    %5 = tpu.matmul %3, %4, %cst {dimension_numbers = #tpu.dot_dimension_numbers<[1], [0], [0], [1], [0, 0, 1, 1], [], []>} : vector<8x64xbf16>, vector<64x192xbf16>, vector<8x192xf32> -> vector<8x192xf32>
    %c0_7 = arith.constant 0 : index
    %c0_8 = arith.constant 0 : index
    %6 = vector.load %arg4[%c0_7, %c0_8] : memref<1x192xf32, #tpu.memory_space<vmem>>, vector<1x192xf32>
    %7 = vector.broadcast %6 : vector<1x192xf32> to vector<8x192xf32>
    %8 = arith.addf %5, %7 : vector<8x192xf32>
    %9 = arith.truncf %8 : vector<8x192xf32> to vector<8x192xbf16>
    %10 = vector.extract_strided_slice %9 {offsets = [0, 0], sizes = [8, 64], strides = [1, 1]} : vector<8x192xbf16> to vector<8x64xbf16>
    %11 = vector.extract_strided_slice %9 {offsets = [0, 64], sizes = [8, 64], strides = [1, 1]} : vector<8x192xbf16> to vector<8x64xbf16>
    %12 = vector.extract_strided_slice %9 {offsets = [0, 128], sizes = [8, 64], strides = [1, 1]} : vector<8x192xbf16> to vector<8x64xbf16>
    %cst_9 = arith.constant 2.500000e-01 : bf16
    %13 = vector.broadcast %cst_9 : bf16 to vector<8x64xbf16>
    %14 = arith.mulf %10, %13 : vector<8x64xbf16>
    %15 = vector.shape_cast %14 : vector<8x64xbf16> to vector<8x4x16xbf16>
    %16 = vector.shape_cast %11 : vector<8x64xbf16> to vector<8x4x16xbf16>
    %17 = vector.shape_cast %12 : vector<8x64xbf16> to vector<8x4x16xbf16>
    "tpu.trace_start"() <{level = 10 : i32, message = "qhd,khd->hqk"}> : () -> ()
    %cst_10 = arith.constant dense<0.000000e+00> : vector<4x8x8xf32>
    %18 = tpu.matmul %15, %16, %cst_10 {dimension_numbers = #tpu.dot_dimension_numbers<[2], [2], [0], [0], [0, 1, 0, 0, 1, 0], [1], [1]>} : vector<8x4x16xbf16>, vector<8x4x16xbf16>, vector<4x8x8xf32> -> vector<4x8x8xf32>
    "tpu.trace_stop"() : () -> ()
    %19 = vector.shape_cast %1 : vector<1x8xf32> to vector<1x1x8xf32>
    %20 = vector.broadcast %19 : vector<1x1x8xf32> to vector<4x8x8xf32>
    %21 = arith.addf %18, %20 : vector<4x8x8xf32>
    %cst_11 = arith.constant dense<0xFF800000> : vector<4x8xf32>
    %22 = vector.multi_reduction <maximumf>, %21, %cst_11 [2] : vector<4x8x8xf32> to vector<4x8xf32>
    %23 = vector.shape_cast %22 : vector<4x8xf32> to vector<4x8x1xf32>
    %24 = vector.broadcast %23 : vector<4x8x1xf32> to vector<4x8x8xf32>
    %25 = arith.subf %21, %24 : vector<4x8x8xf32>
    %26 = math.exp %25 : vector<4x8x8xf32>
    %cst_12 = arith.constant dense<0.000000e+00> : vector<4x8xf32>
    %27 = vector.multi_reduction <add>, %26, %cst_12 [2] : vector<4x8x8xf32> to vector<4x8xf32>
    %28 = vector.shape_cast %27 : vector<4x8xf32> to vector<4x8x1xf32>
    %29 = tpu.reciprocal %28 {approx = true} : vector<4x8x1xf32> -> vector<4x8x1xf32>
    %30 = vector.broadcast %29 : vector<4x8x1xf32> to vector<4x8x8xf32>
    %31 = arith.mulf %26, %30 : vector<4x8x8xf32>
    %32 = arith.truncf %31 : vector<4x8x8xf32> to vector<4x8x8xbf16>
    "tpu.trace_start"() <{level = 10 : i32, message = "hqk,khd->qhd"}> : () -> ()
    %cst_13 = arith.constant dense<0.000000e+00> : vector<4x16x8xf32>
    %33 = tpu.matmul %17, %32, %cst_13 {dimension_numbers = #tpu.dot_dimension_numbers<[0], [2], [2], [1], [0, 1, 0, 2, 1, 1], [1], [0]>} : vector<8x4x16xbf16>, vector<4x8x8xbf16>, vector<4x16x8xf32> -> vector<4x16x8xf32>
    %34 = tpu.transpose %33, [2, 0, 1] : vector<4x16x8xf32> -> vector<8x4x16xf32>
    "tpu.trace_stop"() : () -> ()
    %35 = vector.shape_cast %34 : vector<8x4x16xf32> to vector<8x64xf32>
    %36 = arith.truncf %35 : vector<8x64xf32> to vector<8x64xbf16>
    %c0_14 = arith.constant 0 : index
    %c0_15 = arith.constant 0 : index
    %37 = vector.load %arg5[%c0_14, %c0_15] : memref<64x64xbf16, #tpu.memory_space<vmem>>, vector<64x64xbf16>
    %cst_16 = arith.constant dense<0.000000e+00> : vector<8x64xf32>
    %38 = tpu.matmul %36, %37, %cst_16 {dimension_numbers = #tpu.dot_dimension_numbers<[1], [0], [0], [1], [0, 0, 1, 1], [], []>} : vector<8x64xbf16>, vector<64x64xbf16>, vector<8x64xf32> -> vector<8x64xf32>
    %c0_17 = arith.constant 0 : index
    %c0_18 = arith.constant 0 : index
    %39 = vector.load %arg6[%c0_17, %c0_18] : memref<1x64xf32, #tpu.memory_space<vmem>>, vector<1x64xf32>
    %40 = vector.broadcast %39 : vector<1x64xf32> to vector<8x64xf32>
    %41 = arith.addf %38, %40 : vector<8x64xf32>
    %42 = arith.extf %3 : vector<8x64xbf16> to vector<8x64xf32>
    %43 = arith.addf %42, %41 : vector<8x64xf32>
    %c0_19 = arith.constant 0 : index
    %c0_20 = arith.constant 0 : index
    %44 = vector.load %arg7[%c0_19, %c0_20] : memref<1x64xf32, #tpu.memory_space<vmem>>, vector<1x64xf32>
    %c0_21 = arith.constant 0 : index
    %c0_22 = arith.constant 0 : index
    %45 = vector.load %arg8[%c0_21, %c0_22] : memref<1x64xf32, #tpu.memory_space<vmem>>, vector<1x64xf32>
    %cst_23 = arith.constant dense<0.000000e+00> : vector<8xf32>
    %46 = vector.multi_reduction <add>, %43, %cst_23 [1] : vector<8x64xf32> to vector<8xf32>
    %47 = vector.shape_cast %46 : vector<8xf32> to vector<8x1xf32>
    %cst_24 = arith.constant 6.400000e+01 : f32
    %48 = vector.broadcast %cst_24 : f32 to vector<8x1xf32>
    %49 = arith.divf %47, %48 : vector<8x1xf32>
    %50 = vector.broadcast %49 : vector<8x1xf32> to vector<8x64xf32>
    %51 = arith.subf %43, %50 : vector<8x64xf32>
    %52 = arith.mulf %51, %51 : vector<8x64xf32>
    %cst_25 = arith.constant dense<0.000000e+00> : vector<8xf32>
    %53 = vector.multi_reduction <add>, %52, %cst_25 [1] : vector<8x64xf32> to vector<8xf32>
    %54 = vector.shape_cast %53 : vector<8xf32> to vector<8x1xf32>
    %cst_26 = arith.constant 6.400000e+01 : f32
    %55 = vector.broadcast %cst_26 : f32 to vector<8x1xf32>
    %56 = arith.divf %54, %55 : vector<8x1xf32>
    %57 = vector.broadcast %49 : vector<8x1xf32> to vector<8x64xf32>
    %58 = arith.subf %43, %57 : vector<8x64xf32>
    %cst_27 = arith.constant 9.99999974E-6 : f32
    %59 = vector.broadcast %cst_27 : f32 to vector<8x1xf32>
    %60 = arith.addf %56, %59 : vector<8x1xf32>
    %61 = math.rsqrt %60 : vector<8x1xf32>
    %62 = vector.broadcast %61 : vector<8x1xf32> to vector<8x64xf32>
    %63 = arith.mulf %58, %62 : vector<8x64xf32>
    %64 = vector.broadcast %44 : vector<1x64xf32> to vector<8x64xf32>
    %65 = arith.mulf %63, %64 : vector<8x64xf32>
    %66 = vector.broadcast %45 : vector<1x64xf32> to vector<8x64xf32>
    %67 = arith.addf %65, %66 : vector<8x64xf32>
    %68 = arith.truncf %67 : vector<8x64xf32> to vector<8x64xbf16>
    %c0_28 = arith.constant 0 : index
    %c0_29 = arith.constant 0 : index
    %c0_30 = arith.constant 0 : index
    %69 = vector.load %arg9[%c0_28, %c0_29, %c0_30] : memref<1x8x64xbf16, #tpu.memory_space<vmem>>, vector<1x8x64xbf16>
    %70 = vector.shape_cast %69 : vector<1x8x64xbf16> to vector<8x64xbf16>
    %71 = vector.shape_cast %68 : vector<8x64xbf16> to vector<1x8x64xbf16>
    tpu.vector_store %arg9[%c0_28, %c0_29, %c0_30], %71 {strides = array<i32>} : memref<1x8x64xbf16, #tpu.memory_space<vmem>>, vector<1x8x64xbf16>,
    return
  }
  func.func @transform_0(%arg0: i32) -> (i32, i32, i32) {
    %c0_i32 = arith.constant 0 : i32
    %c0_i32_0 = arith.constant 0 : i32
    %c0_i32_1 = arith.constant 0 : i32
    return %arg0, %c0_i32, %c0_i32_0 : i32, i32, i32
  }
  func.func @transform_1(%arg0: i32) -> (i32, i32, i32) {
    %c0_i32 = arith.constant 0 : i32
    %c0_i32_0 = arith.constant 0 : i32
    %c0_i32_1 = arith.constant 0 : i32
    return %arg0, %c0_i32, %c0_i32_0 : i32, i32, i32
  }
  func.func @transform_2(%arg0: i32) -> (i32, i32) {
    %c0_i32 = arith.constant 0 : i32
    %c0_i32_0 = arith.constant 0 : i32
    %c0_i32_1 = arith.constant 0 : i32
    return %c0_i32, %c0_i32_0 : i32, i32
  }
  func.func @transform_3(%arg0: i32) -> (i32, i32) {
    %c0_i32 = arith.constant 0 : i32
    %c0_i32_0 = arith.constant 0 : i32
    %c0_i32_1 = arith.constant 0 : i32
    return %c0_i32, %c0_i32_0 : i32, i32
  }
  func.func @transform_4(%arg0: i32) -> (i32, i32) {
    %c0_i32 = arith.constant 0 : i32
    %c0_i32_0 = arith.constant 0 : i32
    %c0_i32_1 = arith.constant 0 : i32
    return %c0_i32, %c0_i32_0 : i32, i32
  }
  func.func @transform_5(%arg0: i32) -> (i32, i32) {
    %c0_i32 = arith.constant 0 : i32
    %c0_i32_0 = arith.constant 0 : i32
    %c0_i32_1 = arith.constant 0 : i32
    return %c0_i32, %c0_i32_0 : i32, i32
  }
  func.func @transform_6(%arg0: i32) -> (i32, i32) {
    %c0_i32 = arith.constant 0 : i32
    %c0_i32_0 = arith.constant 0 : i32
    %c0_i32_1 = arith.constant 0 : i32
    return %c0_i32, %c0_i32_0 : i32, i32
  }
  func.func @transform_7(%arg0: i32) -> (i32, i32) {
    %c0_i32 = arith.constant 0 : i32
    %c0_i32_0 = arith.constant 0 : i32
    %c0_i32_1 = arith.constant 0 : i32
    return %c0_i32, %c0_i32_0 : i32, i32
  }
  func.func @transform_8(%arg0: i32) -> (i32, i32, i32) {
    %c0_i32 = arith.constant 0 : i32
    %c0_i32_0 = arith.constant 0 : i32
    %c0_i32_1 = arith.constant 0 : i32
    return %arg0, %c0_i32, %c0_i32_0 : i32, i32, i32
  }
}

</mosaic_0001>

<bundles_post_ra>
// kernel: tpu_custom_call.1
= control target key start
LH: loop header
LB: loop body
LE: loop exit
PB: predicated region body
PF: predicated region fallthrough
CT: control target
= control target key end

     0   :  { %s2087_s0 = inlined_call_operand.hbm [shape: bf16[2,8,64], index: 0, kind: input, shape index: {}]   ;;  %s2088_s1 = inlined_call_operand.hbm [shape: f32[2,1,8], index: 1, kind: input, shape index: {}]   ;;  %s2089_s2 = inlined_call_operand.hbm [shape: bf16[64,192], index: 2, kind: input, shape index: {}]   ;;  %s2090_s3 = inlined_call_operand.vmem [shape: f32[1,192], index: 3, kind: input, shape index: {}]   ;;  %s2091_s4 = inlined_call_operand.hbm [shape: bf16[64,64], index: 4, kind: input, shape index: {}]   ;;  %s2092_s5 = inlined_call_operand.vmem [shape: f32[1,64], index: 5, kind: input, shape index: {}]   ;;  %s2093_s6 = inlined_call_operand.vmem [shape: f32[1,64], index: 6, kind: input, shape index: {}]   ;;  %s2094_s7 = inlined_call_operand.vmem [shape: f32[1,64], index: 7, kind: input, shape index: {}]   ;;  %s2095_s8 = inlined_call_operand.hbm [shape: bf16[2,8,64], index: 8, kind: output, shape index: {}]  }
   0x1   :  { %2100 = sst [smem:[#allocation20_spill]] %s2089_s2 }
   0x2   :  { %2101 = sst [smem:[#allocation21_spill]] %s2091_s4 }
   0x3   :  { %13 = vsyncpa [#allocation3], 0 }
   0x4   :  { %15 = vsyncpa [#allocation3 + $0x1], 0 }
   0x5   :  { %16 = vsyncpa [#allocation6], 0 }
   0x6   :  { %18 = vsyncpa [#allocation6 + $0x1], 0 }
   0x7   :  { %19 = vsyncpa [#allocation9], 0 }
   0x8   :  { %20 = vsyncpa [#allocation4], 0 }
   0x9   :  { %22 = vsyncpa [#allocation4 + $0x1], 0  ;;  %s1816_s27 = smov 0   ;;  %s1818_s28 = smov 0  }
   0xa   :  { %s1820_s29 = smov 0   ;;  %s1822_s30 = smov 0  }
   0xb LB: > { %2102 = sst [smem:[#allocation16_spill]] %s1749_s29  ;;  %s1840_s12 = sadd.s32 4294967295, %s1753_s30   ;;  %s1753_s30 = sphi %s1822_s30, %s2116_s30   ;;  %s1749_s29 = sphi %s1820_s29, %s2118_s29   ;;  %s1745_s28 = sphi %s1818_s28, %s2120_s28   ;;  %s1741_s27 = sphi %s1816_s27, %s2119_s27  }
   0xc   : > { %s2103_s2 = sld [smem:[#allocation20_spill]]  ;;  %p1327_p0 = scmp.ge.s32.totalorder %s1753_s30, 1 }
   0xd   : > { %p49_p1 = scmp.eq.s32.totalorder %s1840_s12, 0  ;;  %p237_p2 = scmp.lt.s32.totalorder %s1753_s30, 3 }
   0xe   : > { %s1755_s14 = smov [#allocation7]   ;;  %s2105_s4 = sld [smem:[#allocation21_spill]] }
   0xf   : > { %p1845_p3 = pnand %p1327_p0, %p237_p2  ;;  %s250_s15 = sshll.u32 %s1755_s14, 4  ;;  %s251_s15 = int_to_ptr.vmem [resolvable:$true] %s250_s15 }
  0x10   : > { %s1756_s19 = smov [#allocation8]   ;;  %s1757_s21 = smov 128  }
  0x11   : > { %p1427_p4 = pneg %p1845_p3  ;;  %s267_s20 = sshll.u32 %s1756_s19, 4  ;;  %s268_s20 = int_to_ptr.vmem [resolvable:$true] %s267_s20 }
  0x12   : > { %s248_s11 = sshll.u32 %s2103_s2, 4  ;;  %s1758_s22 = smov 8   ;;  %s249_s11 = int_to_ptr.hbm [resolvable:$true] %s248_s11 }
  0x13   : > { %p1428_p6 = pnand %p1427_p4, %p49_p1  ;;  %s1759_s23 = smov 64  }
  0x14   : > { %s265_s18 = sshll.u32 %s2105_s4, 4  ;;  %s1760_s24 = smov 4   ;;  %s266_s18 = int_to_ptr.hbm [resolvable:$true] %s265_s18 }
  0x15   : > { %1430 = dma.hbm_to_vmem [thread:$0]  (!%p1428_p6), %s249_s11, 1024, %s251_s15, [#allocation6], %s1757_s21, %s1757_s21, %s1758_s22  }
  0x16   : > { %1433 = dma.hbm_to_vmem [thread:$0]  (!%p1428_p6), %s266_s18, 512, %s268_s20, [#allocation9], %s1759_s23, %s1759_s23, %s1760_s24  }
  0x17   : > { %s1326_s25 = sadd.s32 4294967294, %s1753_s30   ;;  %s1859_s26 = sadd.s32 1, %s1753_s30  }
  0x18   : > { %2106 = sst [smem:[#allocation17_spill]] %s1859_s26  ;;  %s32_s9 = ssub.s32 %s1753_s30, %s1859_s26 }
  0x19   : > { %s35_s10 = sadd.s32 1, %s1749_s29  ;;  %p33_p7 = scmp.eq.s32.totalorder %s32_s9, 0 }
  0x1a   : > { %p42_p8 = scmp.ne.s32.totalorder %s1749_s29, %s1745_s28  ;;  %p43_p9 = scmp.eq.s32.totalorder %s1753_s30, 0 }
  0x1b   : > { %p48_p10 = scmp.ne.s32.totalorder %s1745_s28, %s1741_s27  ;;  %p224_p13 = scmp.eq.s32.totalorder %s1840_s12, 1 }
  0x1c   : > { %s1870_s14 = scalar_select %p33_p7, %s1749_s29, %s35_s10  }
  0x1d   : > { %p1872_p11 = por %p43_p9, %p42_p8  ;;  %p1878_p12 = por %p49_p1, %p48_p10 }
  0x1e   : > { %2107 = sst [smem:[#allocation18_spill]] %s1870_s14  ;;  %p230_p0 = scmp.eq.s32.totalorder %s1326_s25, 1 }
  0x1f   : > { %p1447_p2 = scmp.lt.s32.totalorder %s1753_s30, 2  ;;  %s1885_s16 = sand.u32 1, %s1749_s29  }
  0x20   : > { %p1887_p4 = por %p224_p13, %p42_p8  ;;  %p1891_p6 = por %p230_p0, %p48_p10 }
  0x21   : > { %s1331_s19 = sshll.u32 %s1885_s16, 2  ;;  %s1332_s20 = sshll.u32 %s1753_s30, 2 }
  0x22   : > { %s2111_s18 = scalar_select %p1891_p6, 1, 0 }
  0x23   : > { %s298_s23 = scalar_lea.hbm %s2087_s0, %s1332_s20  ;;  %s294_s24 = scalar_lea.vmem [#allocation2], %s1331_s19 }
  0x24   : > { %2112 = sst [smem:[#allocation19_spill]] %s2111_s18  ;;  %s302_s25 = sshll.u32 %s294_s24, 4  ;;  %s303_s25 = int_to_ptr.vmem [resolvable:$true] %s302_s25 }
  0x25   : > { %s300_s9 = sshll.u32 %s298_s23, 4  ;;  %p1902_p7 = pnand %p1447_p2, %p1872_p11  ;;  %s301_s9 = int_to_ptr.hbm [resolvable:$true] %s300_s9 }
  0x26   : > { %s309_s2 = sand.u32 1, %s1753_s30   ;;  %s291_s4 = scalar_lea.sflag [#allocation3], %s1885_s16 }
  0x27   : > { %s1615_s14 = sshra.s32 %s301_s9, 4  ;;  %p1619_p9 = pneg %p1902_p7  ;;  %s1616_s14 = int_to_ptr.hbm [resolvable:$true] %s1615_s14 }
  0x28   : > { %s1617_s29 = scalar_lea.hbm %s1616_s14, 4  ;;  %s1622_s20 = scalar_lea.hbm %s2087_s0, 8 }
  0x29   : > { %p1618_p8 = scmp.ne.s32.totalorder %s1616_s14, %s1617_s29  ;;  %p1623_p11 = scmp.lt.s32.totalorder %s1616_s14, %s2087_s0 }
  0x2a   : > { %p1624_p0 = scmp.lt.s32.totalorder %s1622_s20, %s1617_s29 }
  0x2b   : > { %p1620_p10 = pnand %p1619_p9, %p1618_p8 }
  0x2c   : > { %p1625_p2 = por %p1624_p0, %p1623_p11 }
  0x2d   : > { %p1621_p13 = pneg %p1620_p10 }
  0x2f   : > { %p1626_p5 = pnand %p1625_p2, %p1621_p13 }
  0x31   : > { %1629 = shalt.err (!%p1626_p5)
}
  0x32   : > { %1437 = dma.hbm_to_vmem [thread:$0]  (!%p1902_p7), %s301_s9, 64, %s303_s25, %s291_s4  }
  0x33   : > { %s315_s26 = scalar_lea.hbm %s2088_s1, %s1753_s30  ;;  %s312_s19 = scalar_lea.vmem [#allocation5], %s1885_s16 }
  0x34   : > { %s319_s11 = sshll.u32 %s312_s19, 4  ;;  %s317_s18 = sshll.u32 %s315_s26, 4  ;;  %s320_s11 = int_to_ptr.vmem [resolvable:$true] %s319_s11  ;;  %s318_s18 = int_to_ptr.hbm [resolvable:$true] %s317_s18 }
  0x35   : > { %s310_s14 = scalar_lea.sflag [#allocation6], %s309_s2  ;;  %s1645_s29 = sshra.s32 %s318_s18, 4  ;;  %s1646_s29 = int_to_ptr.hbm [resolvable:$true] %s1645_s29 }
  0x36   : > { %s1647_s20 = scalar_lea.hbm %s1646_s29, 1  ;;  %s1652_s25 = scalar_lea.hbm %s2088_s1, 2 }
  0x37   : > { %p1648_p5 = scmp.ne.s32.totalorder %s1646_s29, %s1647_s20  ;;  %p1653_p13 = scmp.lt.s32.totalorder %s1646_s29, %s2088_s1 }
  0x38   : > { %p1654_p11 = scmp.lt.s32.totalorder %s1652_s25, %s1647_s20 }
  0x39   : > { %p1650_p8 = pnand %p1648_p5, %p1619_p9 }
  0x3a   : > { %p1655_p0 = por %p1654_p11, %p1653_p13 }
  0x3b   : > { %p1651_p10 = pneg %p1650_p8 }
  0x3d   : > { %p1656_p2 = pnand %p1655_p0, %p1651_p10 }
  0x3f   : > { %1659 = shalt.err (!%p1656_p2)
}
  0x40   : > { %1440 = dma.hbm_to_vmem [thread:$0]  (!%p1902_p7), %s318_s18, 16, %s320_s11, %s310_s14  }
  0x41   : > { %328 = sbr.rel (%p1845_p3) target bundleno = 2003 (0x7d3), region = 52  ;;  %s1940_s2 = sand.u32 (!%p1845_p3), 1, %s1745_s28  }
  0x42   : > { %s1334_s26 = sshll.u32 (!%p1845_p3), %s1940_s2, 2  ;;  %s331_s16 = scalar_lea.sflag (!%p1845_p3), [#allocation3], %s1940_s2 }
  0x43   : > { %s1946_s23 = scalar_lea.vmem (!%p1845_p3), [#allocation2], %s1334_s26 }
  0x46   : > { %1720 = dma.done.wait (%p1878_p12), %s331_s16, 64  }
  0x47   : > { %1722 = vsyncadd (%p1878_p12), %s331_s16, 4294967232  ;;  %s340_s13 = sand.u32 1, %s1840_s12   ;;  %s343_s10 = scalar_lea.vmem [#allocation5], %s1940_s2 }
  0x48   : > { %s341_s18 = scalar_lea.sflag [#allocation6], %s340_s13 }
  0x49   : > { %1724 = dma.done.wait (%p1878_p12), %s341_s18, 16  }
  0x4a   : > { %1726 = vsyncadd (%p1878_p12), %s341_s18, 4294967280 }
  0x4b   : > { %1728 = dma.done.wait (%p49_p1), [#allocation6], 1024  }
  0x4c   : > { %1730 = vsyncadd (%p49_p1), [#allocation6], 4294966272 }
  0x4d   : > { %1732 = dma.done.wait (%p49_p1), [#allocation9], 512  }
  0x4e   : > { %1734 = vsyncadd (%p49_p1), [#allocation9], 4294966784  ;;  %v1364_v0 = vld [vmem:[#allocation7 + $0x30] sm:$0xf]  ;;  %v1408_v1 = vld [vmem:[#allocation7 + $0x34] sm:$0xf0] }
  0x4f   : > { %v1407_v2 = vld [vmem:[#allocation7 + $0x34] sm:$0xf]  ;;  %v1365_v3 = vor.u32 %v1408_v1, %v1364_v0  ;;  %v1366_v4 = vld [vmem:[#allocation7 + $0x38] sm:$0xf0]  ;;  %v1356_v5 = vld [vmem:[#allocation7 + $0x20] sm:$0xf] }
  0x50   : > { %v1406_v6 = vld [vmem:[#allocation7 + $0x24] sm:$0xf0]  ;;  %v1369_v7 = vor.u32 %v1407_v2, %v1366_v4  ;;  %v1405_v8 = vld [vmem:[#allocation7 + $0x24] sm:$0xf]  ;;  %v1358_v9 = vld [vmem:[#allocation7 + $0x28] sm:$0xf0] }
  0x51   : > { %456 = vmatpush.bf16.msra.mxu0 %v1365_v3  ;;  %v1357_v10 = vor.u32 %v1406_v6, %v1356_v5  ;;  %v1361_v11 = vor.u32 %v1405_v8, %v1358_v9  ;;  %v1348_v12 = vld [vmem:[#allocation7 + $0x10] sm:$0xf]  ;;  %v1404_v13 = vld [vmem:[#allocation7 + $0x14] sm:$0xf0]  ;;  %v1403_v14 = vld [vmem:[#allocation7 + $0x14] sm:$0xf] }
  0x52   : > { %469 = vmatpush.bf16.msra.mxu1 %v1369_v7  ;;  %v1350_v15 = vld [vmem:[#allocation7 + $0x18] sm:$0xf0]  ;;  %v1349_v16 = vor.u32 %v1404_v13, %v1348_v12  ;;  %v1340_v18 = vld [vmem:[#allocation7] sm:$0xf]  ;;  %v1402_v19 = vld [vmem:[#allocation7 + $0x4] sm:$0xf0] }
  0x53   : > { %v1353_v17 = vor.u32 %v1403_v14, %v1350_v15  ;;  %v1401_v20 = vld [vmem:[#allocation7 + $0x4] sm:$0xf]  ;;  %v1342_v21 = vld [vmem:[#allocation7 + $0x8] sm:$0xf0]  ;;  %v1341_v22 = vor.u32 %v1402_v19, %v1340_v18  ;;  %v1967_v24 = vld [vmem:[%s1946_s23] sm:$0xf] }
  0x54   : > { %v1345_v23 = vor.u32 %v1401_v20, %v1342_v21  ;;  %vm448_vm0 = vcmask 523264   ;;  %v402_v25 = vld [vmem:[%s2090_s3] sm:$0x3]  ;;  %s1761_s19 = smov 80   ;;  %s1762_s11 = smov 112   ;;  %vm591_vm1 = vcmask 130048  }
  0x55   : > { %457 = vmatpush.bf16.msra.mxu0 %v1357_v10  ;;  %v404_v26 = vperm.slane %v402_v25, 0  ;;  %v405_v27 = vperm.slane %v402_v25, 1  ;;  %s1763_s14 = smov 96   ;;  %s1764_s29 = smov 64   ;;  %v1531_v60 = vld [vmem:[%s343_s10] ss:$0 sm:$0xff] }
  0x56   : > { %470 = vmatpush.bf16.msra.mxu1 %v1361_v11  ;;  %vm656_vm2 = vcmask 64512   ;;  %vm978_vm3 = vcmask 1047556   ;;  %s1767_s20 = smov 48   ;;  %s1768_s21 = smov 32   ;;  %vm1101_vm4 = vcmask 261120   ;;  %vm1103_vm5 = vcmask 392192  }
  0x57   : > { %s1769_s4 = smov 16   ;;  %s1398_s22 = sshll.u32 %s1840_s12, 2  ;;  %vm1200_vm10 = vcmask 519168  }
  0x58   : > { %s1213_s24 = scalar_lea.hbm %s2095_s8, %s1398_s22  ;;  %s390_s12 = scalar_lea.vmem [#allocation10], %s1334_s26 }
  0x59   : > { %458 = vmatpush.bf16.msra.mxu0 %v1349_v16  ;;  %s1695_s26 = scalar_lea.hbm %s2095_s8, 8 }
  0x5a   : > { %471 = vmatpush.bf16.msra.mxu1 %v1353_v17 }
  0x5d   : > { %459 = vmatpush.bf16.msra.mxu0 %v1341_v22 }
  0x5e   : > { %472 = vmatpush.bf16.msra.mxu1 %v1345_v23 }
  0x60   : > { %1370 = vmatmul.msk.bf16.vlgmr.msra.gmra.mxu0 %vm448_vm0, %v1967_v24 }
  0x61   : > { %1371 = vmatmul.msk.bf16.vlgmr.msra.gmra.mxu1 %vm448_vm0, %v1967_v24 }
  0xdd   : > { %v461_v28 = vpop.f32.mrf.mxu0 }
  0xde   : > { %v462_v29 = vadd.f32 %v461_v28, %v404_v26  ;;  %v474_v30 = vpop.f32.mrf.mxu1 }
  0xdf   : > { %v475_v31 = vadd.f32 %v474_v30, %v405_v27 }
  0xe1   : > { %v1976_v32 = vpack.c.bf16 %v475_v31, %v462_v29 }
  0xe3   : > { %494 = vrot.lane.b32.xlu1 %v1976_v32, %s1761_s19  ;;  %490 = vrot.lane.b32.xlu0 %v1976_v32, %s1762_s11  ;;  %v507_v34 = vunpack.c.l.b16 %v1976_v32  ;;  %v479_v37 = vunpack.c.l.bf16 %v1976_v32  ;;  %v496_v14 = vrot.slane %v1976_v32, 4 }
  0xe5   : > { %v463_v33 = vpop.f32.mrf.mxu0  ;;  %v511_v36 = vpack.c.b16 %v507_v34, %v507_v34  ;;  %v480_v38 = vmul.f32 0.25, %v479_v37 }
  0xe6   : > { %v476_v35 = vpop.f32.mrf.mxu1 }
  0xe7   : > { %v481_v39 = vpack.c.bf16 %v480_v38, %v480_v38 }
  0xeb   : > { %492 = vrot.lane.b32.xlu0 %v1976_v32, %s1763_s14  ;;  %515 = vrot.lane.b32.xlu1 %v511_v36, %s1764_s29 }
  0xf3   : > { %483 = vrot.lane.b32.xlu1 %v481_v39, %s1762_s11  ;;  %s1217_s11 = sshll.u32 %s1213_s24, 4  ;;  %s1218_s11 = int_to_ptr.hbm [resolvable:$true] %s1217_s11 }
  0xfb   : > { %487 = vrot.lane.b32.xlu1 %v481_v39, %s1761_s19  ;;  %s1215_s19 = sshll.u32 %s390_s12, 4  ;;  %s1216_s19 = int_to_ptr.vmem [resolvable:$true] %s1215_s19 }
 0x155   : > { %v1983_v40 = vpop.permute.xlu1 %494  ;;  %v491_v41 = vpop.permute.xlu0 %490 }
 0x156   : > { %v510_v42 = vunpack.c.l.b16 %v1983_v40  ;;  %v508_v43 = vunpack.c.l.b16 %v491_v41  ;;  %v498_v13 = vrot.slane %v491_v41, 4  ;;  %v502_v36 = vrot.slane %v1983_v40, 4 }
 0x158   : > { %v514_v44 = vpack.c.b16 %v510_v42, %v510_v42  ;;  %v512_v45 = vpack.c.b16 %v508_v43, %v508_v43 }
 0x15a   : > { %521 = vrot.lane.b32.xlu0 %v514_v44, %s1764_s29  ;;  %517 = vrot.lane.b32.xlu2 %v512_v45, %s1764_s29 }
 0x15d   : > { %v1986_v46 = vpop.permute.xlu0 %492  ;;  %v516_v49 = vpop.permute.xlu1 %515 }
 0x15e   : > { %v509_v47 = vunpack.c.l.b16 %v1986_v46  ;;  %v500_v37 = vrot.slane %v1986_v46, 4 }
 0x160   : > { %v513_v48 = vpack.c.b16 %v509_v47, %v509_v47 }
 0x162   : > { %519 = vrot.lane.b32.xlu2 %v513_v48, %s1764_s29  ;;  %485 = vrot.lane.b32.xlu0 %v481_v39, %s1763_s14  ;;  %s1203_s14 = scalar_lea.sflag [#allocation4], %s1940_s2  ;;  %s1689_s29 = sshra.s32 %s1218_s11, 4  ;;  %s1690_s29 = int_to_ptr.hbm [resolvable:$true] %s1689_s29 }
 0x163   : > { %p1696_p7 = scmp.lt.s32.totalorder %s1690_s29, %s2095_s8 }
 0x165   : > { %v484_v55 = vpop.permute.xlu1 %483 }
 0x16d   : > { %v488_v59 = vpop.permute.xlu1 %487 }
 0x1b4   : > { %v518_v50 = vpop.permute.xlu2 %517 }
 0x1b5   : > { %1501 = vxpose.binary.xlu2.c.b16.start.end [1/2] (short) (narrow) %v518_v50, %v516_v49, 16 }
 0x1bc   : > { %v520_v51 = vpop.permute.xlu2 %519 }
 0x1cc   : > { %v522_v52 = vpop.permute.xlu0 %521 }
 0x1cd   : > { %1504 = vxpose.binary.xlu0.c.b16.start.end [1/2] (short) (narrow) %v522_v52, %v520_v51, 16 }
 0x1d4   : > { %v486_v56 = vpop.permute.xlu0 %485 }
 0x256   : > { %v1502_v53 = vpop.trf.xlu2 }
 0x257   : > { %602 = vmatpush.bf16.msra.mxu2 %v1502_v53 }
 0x25a   : > { %1372 = vmatmul.msk.bf16.vlgmr.msra.gmra.mxu2 %vm591_vm1, %v481_v39 }
 0x25e   : > { %v1503_v54 = vpop.trf.xlu2 }
 0x25f   : > { %618 = vmatpush.bf16.msra.mxu3 %v1503_v54 }
 0x262   : > { %1373 = vmatmul.msk.bf16.vlgmr.msra.gmra.mxu3 %vm591_vm1, %v484_v55 }
 0x279   : > { %v1505_v57 = vpop.trf.xlu0 }
 0x27a   : > { %634 = vmatpush.bf16.msrb.mxu2 %v1505_v57 }
 0x27d   : > { %1374 = vmatmul.msk.bf16.vlgmr.msrb.gmra.mxu2 %vm591_vm1, %v486_v56 }
 0x281   : > { %v1506_v58 = vpop.trf.xlu0 }
 0x282   : > { %650 = vmatpush.bf16.msrb.mxu3 %v1506_v58 }
 0x285   : > { %1375 = vmatmul.msk.bf16.vlgmr.msrb.gmra.mxu3 %vm591_vm1, %v488_v59 }
 0x2dd   : > { %v604_v61 = vpop.f32.mrf.mxu2 }
 0x2de   : > { %v605_v62 = vadd.f32 %v1531_v60, %v604_v61 }
 0x2e0   : > { %v657_v63 = vsel %vm656_vm2, %v605_v62, -inf }
 0x2e1   : > { %658 = vmax.xlane.f32.xlu0 %v657_v63 }
 0x2e5   : > { %v606_v0 = vpop.f32.mrf.mxu2  ;;  %v620_v1 = vpop.f32.mrf.mxu3 }
 0x2e6   : > { %v621_v6 = vadd.f32 %v1531_v60, %v620_v1 }
 0x2e8   : > { %v660_v11 = vsel %vm656_vm2, %v621_v6, -inf }
 0x2ed   : > { %v622_v2 = vpop.f32.mrf.mxu3 }
 0x300   : > { %v636_v3 = vpop.f32.mrf.mxu2 }
 0x301   : > { %v637_v4 = vadd.f32 %v1531_v60, %v636_v3 }
 0x303   : > { %v663_v5 = vsel %vm656_vm2, %v637_v4, -inf }
 0x304   : > { %664 = vmax.xlane.f32.xlu1 %v663_v5 }
 0x308   : > { %v638_v7 = vpop.f32.mrf.mxu2  ;;  %v652_v8 = vpop.f32.mrf.mxu3 }
 0x309   : > { %v653_v9 = vadd.f32 %v1531_v60, %v652_v8 }
 0x30b   : > { %v666_v10 = vsel %vm656_vm2, %v653_v9, -inf }
 0x30c   : > { %667 = vmax.xlane.f32.xlu2 %v666_v10  ;;  %661 = vmax.xlane.f32.xlu1 %v660_v11 }
 0x310   : > { %v654_v12 = vpop.f32.mrf.mxu3 }
 0x335   : > { %1510 = vxpose.binary.xlu2.c.b16.start.end [1/2] (short) (narrow) %v498_v13, %v496_v14, 16  ;;  %v1765_v13 = vmov 1983009808  }
 0x336   : > { %v983_v14 = vunpack.c.l.s4 %v1765_v13 }
 0x354   : > { %v659_v15 = vpop.xlane.xlu0 %658 }
 0x355   : > { %v669_v16 = vsub.f32 %v605_v62, %v659_v15 }
 0x357   : > { %v673_v17 = vmul.f32 1.442695, %v669_v16 }
 0x359   : > { %1535 = vpow2.f32 %v673_v17  ;;  %v984_v17 = vunpack.c.0.s8 %v983_v14 }
 0x35f   : > { %v1536_v18 = vpop.eup %1535 }
 0x360   : > { %v681_v19 = vsel %vm656_vm2, %v1536_v18, 0.0 }
 0x361   : > { %682 = vadd.xlane.f32.xlu1 %v681_v19 }
 0x377   : > { %v665_v20 = vpop.xlane.xlu1 %664 }
 0x378   : > { %v671_v21 = vsub.f32 %v637_v4, %v665_v20  ;;  %v1766_v20 = vmov 1934713408  }
 0x37a   : > { %v677_v22 = vmul.f32 1.442695, %v671_v21  ;;  %v1007_v21 = vunpack.c.l.s4 %v1766_v20 }
 0x37c   : > { %1537 = vpow2.f32 %v677_v22 }
 0x37f   : > { %v662_v23 = vpop.xlane.xlu1 %661  ;;  %v668_v25 = vpop.xlane.xlu2 %667 }
 0x380   : > { %v670_v26 = vsub.f32 %v621_v6, %v662_v23  ;;  %v672_v29 = vsub.f32 %v653_v9, %v668_v25 }
 0x382   : > { %v1538_v27 = vpop.eup %1537  ;;  %v675_v28 = vmul.f32 1.442695, %v670_v26  ;;  %v679_v31 = vmul.f32 1.442695, %v672_v29 }
 0x383   : > { %v687_v30 = vsel %vm656_vm2, %v1538_v27, 0.0 }
 0x384   : > { %688 = vadd.xlane.f32.xlu1 %v687_v30  ;;  %1539 = vpow2.f32 %v675_v28  ;;  %v1008_v30 = vunpack.c.0.s8 %v1007_v21  ;;  %v1412_v21 = vld [vmem:[#allocation8 + $0x18] sm:$0xff] }
 0x385   : > { %1541 = vpow2.f32 %v679_v31 }
 0x38a   : > { %v1540_v32 = vpop.eup %1539 }
 0x38b   : > { %v684_v33 = vsel %vm656_vm2, %v1540_v32, 0.0  ;;  %v1542_v34 = vpop.eup %1541 }
 0x38c   : > { %685 = vadd.xlane.f32.xlu1 %v684_v33  ;;  %v690_v35 = vsel %vm656_vm2, %v1542_v34, 0.0 }
 0x394   : > { %691 = vadd.xlane.f32.xlu1 %v690_v35 }
 0x3ce   : > { %1507 = vxpose.binary.xlu1.c.b16.start.end [1/2] (short) (narrow) %v502_v36, %v500_v37, 16 }
 0x3d4   : > { %v683_v38 = vpop.xlane.xlu1 %682 }
 0x3d5   : > { %1543 = vrcp.f32 %v683_v38 }
 0x3d6   : > { %v1511_v58 = vpop.trf.xlu2 }
 0x3db   : > { %v1544_v39 = vpop.eup %1543 }
 0x3dc   : > { %v697_v41 = vmul.f32 %v1544_v39, %v1536_v18 }
 0x3de   : > { %v701_v42 = vpack.c.bf16 %v697_v41, %v697_v41  ;;  %v1512_v59 = vpop.trf.xlu2 }
 0x3e0   : > { %v773_v43 = vsel %vm656_vm2, %v701_v42, 0 }
 0x3e1   : > { %782 = vmatpush.bf16.xpose.msrb.mxu0 %v773_v43 }
 0x3e8   : > { %1376 = vmatmul.msk.bf16.vlgmr.msrb.gmra.mxu0 %vm656_vm2, %v1511_v58 }
 0x3e9   : > { %1149 = vmatpush.bf16.msra.mxu0 %v1412_v21 }
 0x3f7   : > { %v689_v44 = vpop.xlane.xlu1 %688 }
 0x3f8   : > { %1545 = vrcp.f32 %v689_v44 }
 0x3fe   : > { %v1546_v45 = vpop.eup %1545 }
 0x3ff   : > { %v699_v47 = vmul.f32 %v1546_v45, %v1538_v27  ;;  %v686_v48 = vpop.xlane.xlu1 %685 }
 0x400   : > { %1547 = vrcp.f32 %v686_v48 }
 0x401   : > { %v703_v49 = vpack.c.bf16 %v699_v47, %v699_v47 }
 0x403   : > { %v813_v40 = vsel %vm656_vm2, %v703_v49, 0 }
 0x404   : > { %822 = vmatpush.bf16.xpose.msra.mxu2 %v813_v40 }
 0x406   : > { %v1548_v46 = vpop.eup %1547 }
 0x407   : > { %v692_v50 = vpop.xlane.xlu1 %691  ;;  %v698_v51 = vmul.f32 %v1548_v46, %v1540_v32 }
 0x408   : > { %1549 = vrcp.f32 %v692_v50 }
 0x409   : > { %v702_v52 = vpack.c.bf16 %v698_v51, %v698_v51 }
 0x40b   : > { %v793_v53 = vsel %vm656_vm2, %v702_v52, 0 }
 0x40c   : > { %802 = vmatpush.bf16.xpose.msrb.mxu1 %v793_v53 }
 0x40e   : > { %v1550_v54 = vpop.eup %1549 }
 0x40f   : > { %v700_v55 = vmul.f32 %v1550_v54, %v1542_v34 }
 0x411   : > { %v704_v56 = vpack.c.bf16 %v700_v55, %v700_v55 }
 0x413   : > { %v833_v57 = vsel %vm656_vm2, %v704_v56, 0  ;;  %1377 = vmatmul.msk.bf16.vlgmr.msrb.gmra.mxu1 %vm656_vm2, %v1512_v59 }
 0x414   : > { %842 = vmatpush.bf16.xpose.msra.mxu3 %v833_v57 }
 0x465   : > { %v784_v62 = vpop.f32.mrf.mxu0 }
 0x46d   : > { %v786_v2 = vpop.f32.mrf.mxu0 }
 0x47a   : > { %v1508_v60 = vpop.trf.xlu1 }
 0x47b   : > { %1378 = vmatmul.msk.bf16.vlgmr.msra.gmra.mxu2 %vm656_vm2, %v1508_v60 }
 0x482   : > { %v1509_v61 = vpop.trf.xlu1 }
 0x483   : > { %1379 = vmatmul.msk.bf16.vlgmr.msra.gmra.mxu3 %vm656_vm2, %v1509_v61 }
 0x490   : > { %v804_v1 = vpop.f32.mrf.mxu1 }
 0x498   : > { %v806_v7 = vpop.f32.mrf.mxu1 }
 0x4fe   : > { %v824_v63 = vpop.f32.mrf.mxu2 }
 0x4ff   : > { %v1513_v0 = vpack.i.bf16 %v784_v62, %v824_v63 }
 0x501   : > { %1514 = vxpose.xlu1.b32.start [1/2] (short) (narrow) %v1513_v0, 8 }
 0x506   : > { %v844_v3 = vpop.f32.mrf.mxu3  ;;  %v826_v4 = vpop.f32.mrf.mxu2 }
 0x507   : > { %v1522_v5 = vpack.i.bf16 %v804_v1, %v844_v3  ;;  %v1515_v6 = vpack.i.bf16 %v786_v2, %v826_v4 }
 0x509   : > { %1523 = vxpose.xlu0.b32.start [1/2] (short) (narrow) %v1522_v5, 8  ;;  %1516 = vxpose.xlu1.b32.end [2/2] (short) (narrow) %v1515_v6, 8 }
 0x50e   : > { %v846_v8 = vpop.f32.mrf.mxu3 }
 0x50f   : > { %v1524_v9 = vpack.i.bf16 %v806_v7, %v846_v8 }
 0x511   : > { %1525 = vxpose.xlu0.b32.end [2/2] (short) (narrow) %v1524_v9, 8 }
 0x5a5   : > { %v1517_v10 = vpop.trf.xlu1 }
 0x5a6   : > { %v1521_v11 = vunpack.i.h.bf16 %v1517_v10  ;;  %v1518_v12 = vunpack.i.l.bf16 %v1517_v10 }
 0x5a8   : > { %v980_v15 = vrot.slane %v1521_v11, 4  ;;  %v977_v16 = vrot.slane %v1518_v12, 4 }
 0x5aa   : > { %v979_v18 = vsel %vm978_vm3, %v977_v16, %v1521_v11  ;;  %v981_v19 = vsel %vm978_vm3, %v1518_v12, %v980_v15 }
 0x5ab   : > { %v985_v26 = vperm.slane %v979_v18, %v984_v17  ;;  %v989_v27 = vperm.slane %v981_v19, %v984_v17 }
 0x5ad   : > { %v1526_v22 = vpop.trf.xlu0  ;;  %v1004_v33 = vrot.slane %v985_v26, 4  ;;  %v1016_v34 = vrot.slane %v989_v27, 4 }
 0x5ae   : > { %v1530_v23 = vunpack.i.h.bf16 %v1526_v22  ;;  %v1527_v25 = vunpack.i.l.bf16 %v1526_v22  ;;  %v1411_v22 = vld [vmem:[#allocation8 + $0x10] sm:$0xff] }
 0x5af   : > { %1150 = vmatpush.bf16.msra.mxu0 %v1411_v22 }
 0x5b0   : > { %v992_v28 = vrot.slane %v1530_v23, 4  ;;  %v990_v29 = vrot.slane %v1527_v25, 4 }
 0x5b2   : > { %v991_v31 = vsel %vm978_vm3, %v990_v29, %v1530_v23  ;;  %v993_v32 = vsel %vm978_vm3, %v1527_v25, %v992_v28  ;;  %v1410_v23 = vld [vmem:[#allocation8 + $0x8] sm:$0xff]  ;;  %v1409_v25 = vld [vmem:[#allocation8] sm:$0xff] }
 0x5b3   : > { %v997_v35 = vperm.slane %v991_v31, %v984_v17  ;;  %v1001_v36 = vperm.slane %v993_v32, %v984_v17  ;;  %1151 = vmatpush.bf16.msra.mxu0 %v1410_v23 }
 0x5b5   : > { %v1002_v37 = vrot.slane %v997_v35, 4  ;;  %v1005_v38 = vsel %vm978_vm3, %v997_v35, %v1004_v33  ;;  %v1014_v39 = vrot.slane %v1001_v36, 4  ;;  %v1017_v41 = vsel %vm978_vm3, %v1001_v36, %v1016_v34  ;;  %v1532_v33 = vld [vmem:[%s2092_s5] ss:$0 sm:$0xff] }
 0x5b6   : > { %v1013_v42 = vperm.slane %v1005_v38, %v1008_v30  ;;  %v1025_v43 = vperm.slane %v1017_v41, %v1008_v30  ;;  %v1158_v34 = vunpack.c.l.bf16 %v1967_v24  ;;  %v1770_v41 = vmov 64.0  }
 0x5b7   : > { %v1003_v44 = vsel %vm978_vm3, %v1002_v37, %v985_v26  ;;  %v1015_v45 = vsel %vm978_vm3, %v1014_v39, %v989_v27  ;;  %1152 = vmatpush.bf16.msra.mxu0 %v1409_v25  ;;  %1551 = vrcp.f32 %v1770_v41 }
 0x5b8   : > { %v1009_v47 = vperm.slane %v1003_v44, %v1008_v30  ;;  %v1028_v48 = vrot.slane %v1013_v42, 4  ;;  %v1021_v49 = vperm.slane %v1015_v45, %v1008_v30  ;;  %v1032_v40 = vrot.slane %v1025_v43, 4 }
 0x5ba   : > { %v1026_v46 = vrot.slane %v1009_v47, 4  ;;  %v1029_v50 = vsel %vm978_vm3, 0.0, %v1028_v48  ;;  %v1030_v51 = vrot.slane %v1021_v49, 4  ;;  %v1033_v52 = vsel %vm978_vm3, 0.0, %v1032_v40 }
 0x5bb   : > { %v1039_v53 = vrot.slane %v1029_v50, 4  ;;  %v1034_v54 = vsel %vm978_vm3, %v1028_v48, %v1009_v47  ;;  %v1045_v55 = vsel %vm978_vm3, %v1032_v40, %v1021_v49  ;;  %v1050_v56 = vrot.slane %v1033_v52, 4 }
 0x5bc   : > { %v1027_v57 = vsel %vm978_vm3, 0.0, %v1026_v46  ;;  %v1031_v58 = vsel %vm978_vm3, 0.0, %v1030_v51  ;;  %v1038_v59 = vperm.slane %v1034_v54, %v984_v17  ;;  %v1049_v60 = vperm.slane %v1045_v55, %v984_v17 }
 0x5bd   : > { %v1040_v61 = vsel %vm978_vm3, %v1039_v53, %v1027_v57  ;;  %v1051_v62 = vsel %vm978_vm3, %v1050_v56, %v1031_v58  ;;  %v1552_v42 = vpop.eup %1551 }
 0x5be   : > { %v1044_v63 = vperm.slane %v1040_v61, %v984_v17  ;;  %v1055_v0 = vperm.slane %v1051_v62, %v984_v17  ;;  %v1058_v1 = vrot.slane %v1038_v59, 4  ;;  %v1070_v2 = vrot.slane %v1049_v60, 4  ;;  %v1534_v62 = vld [vmem:[%s2094_s7] ss:$0 sm:$0xff] }
 0x5bf   : > { %v1166_v43 = vmul.f32 64.0, %v1552_v42  ;;  %vm1170_vm6 = vweird.f32 %v1552_v42 }
 0x5c0   : > { %v1056_v3 = vrot.slane %v1044_v63, 4  ;;  %v1068_v4 = vrot.slane %v1055_v0, 4  ;;  %v1059_v5 = vsel %vm978_vm3, %v1044_v63, %v1058_v1  ;;  %v1071_v6 = vsel %vm978_vm3, %v1055_v0, %v1070_v2 }
 0x5c1   : > { %v1067_v7 = vperm.slane %v1059_v5, %v1008_v30  ;;  %v1079_v8 = vperm.slane %v1071_v6, %v1008_v30  ;;  %v1167_v44 = vsub.f32 1.0, %v1166_v43 }
 0x5c2   : > { %v1057_v9 = vsel %vm978_vm3, %v1056_v3, %v1038_v59  ;;  %v1069_v10 = vsel %vm978_vm3, %v1068_v4, %v1049_v60  ;;  %v1533_v60 = vld [vmem:[%s2093_s6] ss:$0 sm:$0xff] }
 0x5c3   : > { %v1063_v11 = vperm.slane %v1057_v9, %v1008_v30  ;;  %v1075_v12 = vperm.slane %v1069_v10, %v1008_v30  ;;  %v1086_v13 = vrot.slane %v1067_v7, 4  ;;  %v1084_v14 = vrot.slane %v1079_v8, 4 }
 0x5c4   : > { %v1168_v45 = vmul.f32 %v1552_v42, %v1167_v44 }
 0x5c5   : > { %v1080_v15 = vrot.slane %v1075_v12, 4  ;;  %v1082_v16 = vrot.slane %v1063_v11, 4  ;;  %v1087_v17 = vsel %vm978_vm3, %v1079_v8, %v1086_v13  ;;  %v1085_v18 = vsel %vm978_vm3, %v1084_v14, %v1067_v7 }
 0x5c6   : > { %1097 = vrot.lane.b32.xlu0 %v1087_v17, %s1767_s20  ;;  %1093 = vrot.lane.b32.xlu2 %v1085_v18, %s1768_s21  ;;  %v1169_v47 = vadd.f32 %v1552_v42, %v1168_v45  ;;  %s1691_s20 = scalar_lea.hbm %s1690_s29, 4 }
 0x5c7   : > { %v1083_v19 = vsel %vm978_vm3, %v1075_v12, %v1082_v16  ;;  %v1081_v20 = vsel %vm978_vm3, %v1080_v15, %v1063_v11  ;;  %p1692_p1 = scmp.ne.s32.totalorder %s1690_s29, %s1691_s20  ;;  %p1697_p9 = scmp.lt.s32.totalorder %s1695_s26, %s1691_s20 }
 0x5c8   : > { %1089 = vrot.lane.b32.xlu1 %v1083_v19, %s1769_s4  ;;  %v1171_v48 = vsel %vm1170_vm6, %v1552_v42, %v1169_v47 }
 0x5c9   : > { %p1693_p3 = pnand %p1692_p1, %p1887_p4  ;;  %p1698_p5 = por %p1697_p9, %p1696_p7 }
 0x5cb   : > { %p1694_p12 = pneg %p1693_p3 }
 0x5cd   : > { %p1699_p8 = pnand %p1698_p5, %p1694_p12 }
 0x620   : > { %v1094_v27 = vpop.permute.xlu2 %1093 }
 0x638   : > { %v1098_v29 = vpop.permute.xlu0 %1097 }
 0x63a   : > { %v1090_v26 = vpop.permute.xlu1 %1089 }
 0x63b   : > { %v1100_v28 = vsel %vm591_vm1, %v1081_v20, %v1090_v26 }
 0x63c   : > { %v1102_v30 = vsel %vm1101_vm4, %v1100_v28, %v1094_v27 }
 0x63d   : > { %v1104_v31 = vsel %vm1103_vm5, %v1102_v30, %v1098_v29 }
 0x63e   : > { %v1105_v32 = vpack.c.bf16 %v1104_v31, %v1104_v31 }
 0x640   : > { %1396 = vmatmul.msk.bf16.vlgmr.msra.gmra.mxu0 %vm448_vm0, %v1105_v32 }
 0x6bd   : > { %v1154_v35 = vpop.f32.mrf.mxu0 }
 0x6be   : > { %v1155_v36 = vadd.f32 %v1532_v33, %v1154_v35 }
 0x6c0   : > { %v1159_v37 = vadd.f32 %v1158_v34, %v1155_v36 }
 0x6c2   : > { %v1162_v38 = vsel %vm448_vm0, %v1159_v37, 0.0 }
 0x6c3   : > { %1163 = vadd.xlane.f32.xlu1 %v1162_v38 }
 0x6c5   : > { %v1156_v39 = vpop.f32.mrf.mxu0 }
 0x736   : > { %v1164_v49 = vpop.xlane.xlu1 %1163 }
 0x737   : > { %v1172_v40 = vmul.f32 %v1171_v48, %v1164_v49 }
 0x739   : > { %v1173_v46 = vsub.f32 %v1159_v37, %v1172_v40 }
 0x73b   : > { %v1174_v24 = vmul.f32 %v1173_v46, %v1173_v46 }
 0x73d   : > { %v1175_v50 = vsel %vm448_vm0, %v1174_v24, 0.0 }
 0x73e   : > { %1176 = vadd.xlane.f32.xlu2 %v1175_v50 }
 0x7b1   : > { %v1177_v51 = vpop.xlane.xlu2 %1176 }
 0x7b2   : > { %v1178_v52 = vmul.f32 %v1177_v51, %v1171_v48 }
 0x7b4   : > { %v1179_v53 = vadd.f32 1e-05, %v1178_v52 }
 0x7b6   : > { %1553 = vrsqrt.f32 %v1179_v53  ;;  %vm1186_vm8 = vweird.f32 %v1179_v53 }
 0x7bc   : > { %v1554_v54 = vpop.eup %1553 }
 0x7bd   : > { %v1181_v55 = vmul.f32 %v1554_v54, %v1179_v53  ;;  %vm1187_vm7 = vweird.f32 %v1554_v54 }
 0x7be   : > { %vm1188_vm9 = vmor %vm1186_vm8, %vm1187_vm7 }
 0x7bf   : > { %v1182_v56 = vmul.f32 %v1554_v54, %v1181_v55 }
 0x7c1   : > { %v1183_v57 = vmul.f32 0.5, %v1182_v56 }
 0x7c3   : > { %v1184_v58 = vsub.f32 1.5, %v1183_v57 }
 0x7c5   : > { %v1185_v59 = vmul.f32 %v1554_v54, %v1184_v58 }
 0x7c7   : > { %v1189_v61 = vsel %vm1188_vm9, %v1554_v54, %v1185_v59 }
 0x7c8   : > { %v1190_v63 = vmul.f32 %v1189_v61, %v1173_v46 }
 0x7ca   : > { %v1194_v0 = vmul.f32 %v1533_v60, %v1190_v63 }
 0x7cc   : > { %v1198_v1 = vadd.f32 %v1534_v62, %v1194_v0 }
 0x7ce   : > { %v1199_v2 = vpack.c.bf16 %v1198_v1, %v1198_v1 }
 0x7d0   : > { %1201 = vst.msk [vmem:[%s390_s12] sm:$0xf] %vm1200_vm10, %v1199_v2 }
 0x7d1   : > { %1702 = shalt.err (!%p1699_p8)
}
 0x7d2   : > { %1425 = dma.vmem_to_hbm [thread:$0]  (%p1887_p4), %s1216_s19, 64, %s1218_s11, %s1203_s14  }
 0x7d3 PF: > { %s1229_s22 = sand.u32 1, %s1741_s27   ;;  %p2115_p10 = scmp.ge.s32.totalorder %s1753_s30, 2 }
 0x7d4   : > { %s1230_s16 = scalar_lea.sflag [#allocation4], %s1229_s22 }
 0x7d5   : > { %p1442_p13 = pnand %p2115_p10, %p1891_p6 }
 0x7d7   : > { %p1443_p11 = pneg %p1442_p13 }
 0x7d9   : > { %1736 = dma.done.wait (%p1443_p11), %s1230_s16, 64  }
 0x7da   : > { %1738 = vsyncadd (%p1443_p11), %s1230_s16, 4294967232  ;;  %s2116_s30 = sld [smem:[#allocation17_spill]]  ;;  %s2119_s27 = smov %s1745_s28 }
 0x7db   : > { %s2117_s23 = sld [smem:[#allocation16_spill]] }
 0x7dc   : > { %s2118_s29 = sld [smem:[#allocation18_spill]] }
 0x7e0   : > { %p25_p0 = scmp.ge.s32.totalorder %s2116_s30, 4  }
 0x7e1   : > { %s2120_s28 = smov %s2117_s23 }
 0x7e2   :  { %27 = sbr.rel (!%p25_p0) target bundleno = 11 (0xb), region = 118 }
 0x7e7   :  { %1236 = vsyncpa [#allocation3], 1 }
 0x7e8   :  { %1238 = vsyncpa [#allocation3 + $0x1], 1 }
 0x7e9   :  { %1239 = vsyncpa [#allocation6], 1 }
 0x7ea   :  { %1241 = vsyncpa [#allocation6 + $0x1], 1 }
 0x7eb   :  { %1242 = vsyncpa [#allocation9], 1 }
 0x7ec   :  { %1243 = vsyncpa [#allocation4], 1 }
 0x7ed   :  { %1245 = vsyncpa [#allocation4 + $0x1], 1 }

</bundles_post_ra>
